<compile_context>
chip_gen: v7x
topology: tpu7x:2x2x1
jax: 0.10.0
libtpu: 0.0.40
codegen_flags: <defaults>
</compile_context>

<pallas_src>
import functools

import jax
import jax.numpy as jnp
from jax.experimental import pallas as pl
from jax.experimental.pallas import tpu as pltpu

# ----- model hyperparameters (small, consistent with the module) -----
B = 2           # batch
N = 8           # sequence length
DIM = 32        # model dim
HEADS = 4       # heads
DIM_HEAD = 16   # per-head dim
INNER = HEADS * DIM_HEAD            # 64
SCALE = DIM_HEAD ** (-0.5)
# project_out = not (heads == 1 and dim_head == dim)  -> True here


def attention_kernel(x_ref, wqkv_ref, wob_ref, o_ref, *, batch, heads, dim_head):
    # x_ref   : (B, N, D)
    # wqkv_ref: (D, 3*INNER)        scale already folded into the Q columns
    # wob_ref : (INNER + 1, D)      rows [0:INNER] = Wout, row INNER = bias
    # o_ref   : (B, N, D)
    b = batch
    _, n, d = x_ref.shape
    e = dim_head
    inner = heads * dim_head
    g = heads * b

    # ---- fused QKV projection: one lane-dense matmul over all tokens ----
    x2 = x_ref[...].reshape(b * n, d)                                   # (16, 32)
    qkv = jnp.dot(x2, wqkv_ref[...],
                  preferred_element_type=jnp.float32)                   # (16, 192)

    # Regroup 'b n (h d)' -> '(h b) n d' using only lane slices + leading-axis
    # stack + leading-dim reshape (no 4-D transposes). Group index g = h*B + b.
    def to_groups(base):
        cols = [qkv[:, base + h * e: base + (h + 1) * e] for h in range(heads)]
        return jnp.stack(cols, axis=0).reshape(g, n, e)                 # (G, N, E)

    qg = to_groups(0)            # scale pre-folded into wqkv
    kg = to_groups(inner)
    vg = to_groups(2 * inner)

    # ---- per-(head, batch) attention: batched MXU ops, single leading batch dim ----
    dots = jnp.einsum('gqe,gke->gqk', qg, kg,
                      preferred_element_type=jnp.float32)               # (G, N, N)

    # numerically stable softmax in f32; dropout(p=0.0) is identity
    m = jnp.max(dots, axis=-1, keepdims=True)
    p = jnp.exp(dots - m)
    attn = p / jnp.sum(p, axis=-1, keepdims=True)

    og = jnp.einsum('gqk,gke->gqe', attn, vg,
                    preferred_element_type=jnp.float32)                 # (G, N, E)

    # ---- heads back onto lanes: '(h b) n d' -> 'b n (h d)' via 4-way lane concat ----
    oc = jnp.concatenate(
        [og[h * b:(h + 1) * b].reshape(b * n, e) for h in range(heads)],
        axis=-1)                                                        # (16, 64)

    # ---- single output projection + bias (bias packed as last row of wob) ----
    wo = wob_ref[:inner, :]                                             # (64, 32)
    bias = wob_ref[inner:inner + 1, :]                                  # (1, 32)
    y = jnp.dot(oc, wo, preferred_element_type=jnp.float32) + bias      # (16, 32)
    o_ref[...] = y.reshape(b, n, d).astype(o_ref.dtype)


def attention_block(x, wqkv, wout, bout):
    """AttentionBlock forward (single f32 path, module-faithful numerics)."""
    b, n, d = x.shape
    assert d == DIM and wqkv.shape == (DIM, 3 * INNER) and wout.shape == (INNER, DIM)

    # --- one-time weight prep (would live in model init in practice) ---
    # fold the softmax scale into the Q columns of the fused QKV weight
    col_scale = jnp.concatenate([
        jnp.full((INNER,), SCALE, dtype=wqkv.dtype),
        jnp.ones((2 * INNER,), dtype=wqkv.dtype)])
    wqkv_s = wqkv * col_scale[None, :]                                  # (32, 192)
    # pack output projection + bias into one slab -> one DMA instead of two
    wob = jnp.concatenate([wout, bout.reshape(1, DIM)], axis=0)         # (65, 32)

    kernel = functools.partial(attention_kernel,
                               batch=b, heads=HEADS, dim_head=DIM_HEAD)

    vmem = pl.BlockSpec(memory_space=pltpu.MemorySpace.VMEM)   # whole array, VMEM-resident
    return pl.pallas_call(
        kernel,
        out_shape=jax.ShapeDtypeStruct((b, n, d), x.dtype),
        in_specs=[vmem, vmem, vmem],
        out_specs=vmem,
    )(x, wqkv_s, wob)


def attention_block_ref(x, wqkv, wout, bout):
    # pure-JAX reference mirroring the PyTorch forward
    b, n, _ = x.shape
    qkv = x @ wqkv                                            # (B, N, 3*INNER)
    q, k, v = jnp.split(qkv, 3, axis=-1)
    def to_heads(t):  # 'b n (h d) -> b h n d'
        return t.reshape(b, n, HEADS, DIM_HEAD).transpose(0, 2, 1, 3)
    q, k, v = map(to_heads, (q, k, v))
    dots = jnp.einsum('bhnd,bhmd->bhnm', q, k) * SCALE
    attn = jax.nn.softmax(dots, axis=-1)
    out = jnp.einsum('bhnm,bhmd->bhnd', attn, v)
    out = out.transpose(0, 2, 1, 3).reshape(b, n, INNER)      # 'b h n d -> b n (h d)'
    return out @ wout + bout


if __name__ == "__main__":
    key = jax.random.PRNGKey(0)
    kx, kq, ko, kb = jax.random.split(key, 4)

    # deterministic parameter init (shapes from the module __init__)
    x = jax.random.normal(kx, (B, N, DIM), dtype=jnp.float32)
    wqkv = jax.random.normal(kq, (DIM, 3 * INNER), dtype=jnp.float32) * 0.05
    wout = jax.random.normal(ko, (INNER, DIM), dtype=jnp.float32) * 0.05
    bout = jax.random.normal(kb, (DIM,), dtype=jnp.float32) * 0.05

    y = jax.block_until_ready(attention_block(x, wqkv, wout, bout))
    y_ref = attention_block_ref(x, wqkv, wout, bout)

    assert y.shape == (B, N, DIM)
    assert jnp.allclose(y, y_ref, atol=1e-4, rtol=1e-4), "kernel mismatch vs JAX reference"

    print("KERNEL_OK")
</pallas_src>

<mosaic_0001>
module attributes {stable_mosaic.version = 11 : i64} {
  func.func @attention_kernel(%arg0: memref<2x8x32xf32, #tpu.memory_space<vmem>>, %arg1: memref<32x192xf32, #tpu.memory_space<vmem>>, %arg2: memref<65x32xf32, #tpu.memory_space<vmem>>, %arg3: memref<2x8x32xf32, #tpu.memory_space<vmem>>) attributes {dimension_semantics = [], scalar_prefetch = 0 : i64, scratch_operands = 0 : i64, tpu.core_type = #tpu.core_type<tc>} {
    %c0 = arith.constant 0 : index
    %c0_0 = arith.constant 0 : index
    %c0_1 = arith.constant 0 : index
    %0 = vector.load %arg0[%c0, %c0_0, %c0_1] : memref<2x8x32xf32, #tpu.memory_space<vmem>>, vector<2x8x32xf32>
    %1 = vector.shape_cast %0 : vector<2x8x32xf32> to vector<16x32xf32>
    %c0_2 = arith.constant 0 : index
    %c0_3 = arith.constant 0 : index
    %2 = vector.load %arg1[%c0_2, %c0_3] : memref<32x192xf32, #tpu.memory_space<vmem>>, vector<32x192xf32>
    %cst = arith.constant dense<0.000000e+00> : vector<16x192xf32>
    %3 = tpu.matmul %1, %2, %cst {dimension_numbers = #tpu.dot_dimension_numbers<[1], [0], [0], [1], [0, 0, 1, 1], [], []>} : vector<16x32xf32>, vector<32x192xf32>, vector<16x192xf32> -> vector<16x192xf32>
    %4 = vector.extract_strided_slice %3 {offsets = [0, 0], sizes = [16, 16], strides = [1, 1]} : vector<16x192xf32> to vector<16x16xf32>
    %5 = vector.extract_strided_slice %3 {offsets = [0, 16], sizes = [16, 16], strides = [1, 1]} : vector<16x192xf32> to vector<16x16xf32>
    %6 = vector.extract_strided_slice %3 {offsets = [0, 32], sizes = [16, 16], strides = [1, 1]} : vector<16x192xf32> to vector<16x16xf32>
    %7 = vector.extract_strided_slice %3 {offsets = [0, 48], sizes = [16, 16], strides = [1, 1]} : vector<16x192xf32> to vector<16x16xf32>
    %8 = vector.shape_cast %4 : vector<16x16xf32> to vector<1x16x16xf32>
    %9 = vector.shape_cast %5 : vector<16x16xf32> to vector<1x16x16xf32>
    %10 = vector.shape_cast %6 : vector<16x16xf32> to vector<1x16x16xf32>
    %11 = vector.shape_cast %7 : vector<16x16xf32> to vector<1x16x16xf32>
    %12 = tpu.concatenate %8, %9, %10, %11 in 0 : vector<1x16x16xf32>, vector<1x16x16xf32>, vector<1x16x16xf32>, vector<1x16x16xf32> -> vector<4x16x16xf32>
    %13 = vector.shape_cast %12 : vector<4x16x16xf32> to vector<8x8x16xf32>
    %14 = vector.extract_strided_slice %3 {offsets = [0, 64], sizes = [16, 16], strides = [1, 1]} : vector<16x192xf32> to vector<16x16xf32>
    %15 = vector.extract_strided_slice %3 {offsets = [0, 80], sizes = [16, 16], strides = [1, 1]} : vector<16x192xf32> to vector<16x16xf32>
    %16 = vector.extract_strided_slice %3 {offsets = [0, 96], sizes = [16, 16], strides = [1, 1]} : vector<16x192xf32> to vector<16x16xf32>
    %17 = vector.extract_strided_slice %3 {offsets = [0, 112], sizes = [16, 16], strides = [1, 1]} : vector<16x192xf32> to vector<16x16xf32>
    %18 = vector.shape_cast %14 : vector<16x16xf32> to vector<1x16x16xf32>
    %19 = vector.shape_cast %15 : vector<16x16xf32> to vector<1x16x16xf32>
    %20 = vector.shape_cast %16 : vector<16x16xf32> to vector<1x16x16xf32>
    %21 = vector.shape_cast %17 : vector<16x16xf32> to vector<1x16x16xf32>
    %22 = tpu.concatenate %18, %19, %20, %21 in 0 : vector<1x16x16xf32>, vector<1x16x16xf32>, vector<1x16x16xf32>, vector<1x16x16xf32> -> vector<4x16x16xf32>
    %23 = vector.shape_cast %22 : vector<4x16x16xf32> to vector<8x8x16xf32>
    %24 = vector.extract_strided_slice %3 {offsets = [0, 128], sizes = [16, 16], strides = [1, 1]} : vector<16x192xf32> to vector<16x16xf32>
    %25 = vector.extract_strided_slice %3 {offsets = [0, 144], sizes = [16, 16], strides = [1, 1]} : vector<16x192xf32> to vector<16x16xf32>
    %26 = vector.extract_strided_slice %3 {offsets = [0, 160], sizes = [16, 16], strides = [1, 1]} : vector<16x192xf32> to vector<16x16xf32>
    %27 = vector.extract_strided_slice %3 {offsets = [0, 176], sizes = [16, 16], strides = [1, 1]} : vector<16x192xf32> to vector<16x16xf32>
    %28 = vector.shape_cast %24 : vector<16x16xf32> to vector<1x16x16xf32>
    %29 = vector.shape_cast %25 : vector<16x16xf32> to vector<1x16x16xf32>
    %30 = vector.shape_cast %26 : vector<16x16xf32> to vector<1x16x16xf32>
    %31 = vector.shape_cast %27 : vector<16x16xf32> to vector<1x16x16xf32>
    %32 = tpu.concatenate %28, %29, %30, %31 in 0 : vector<1x16x16xf32>, vector<1x16x16xf32>, vector<1x16x16xf32>, vector<1x16x16xf32> -> vector<4x16x16xf32>
    %33 = vector.shape_cast %32 : vector<4x16x16xf32> to vector<8x8x16xf32>
    "tpu.trace_start"() <{level = 10 : i32, message = "gqe,gke->gqk"}> : () -> ()
    %cst_4 = arith.constant dense<0.000000e+00> : vector<8x8x8xf32>
    %34 = tpu.matmul %13, %23, %cst_4 {dimension_numbers = #tpu.dot_dimension_numbers<[2], [2], [1], [1], [0, 0, 0, 1, 1, 1], [0], [0]>} : vector<8x8x16xf32>, vector<8x8x16xf32>, vector<8x8x8xf32> -> vector<8x8x8xf32>
    "tpu.trace_stop"() : () -> ()
    %cst_5 = arith.constant dense<0xFF800000> : vector<8x8xf32>
    %35 = vector.multi_reduction <maximumf>, %34, %cst_5 [2] : vector<8x8x8xf32> to vector<8x8xf32>
    %36 = vector.shape_cast %35 : vector<8x8xf32> to vector<8x8x1xf32>
    %37 = vector.broadcast %36 : vector<8x8x1xf32> to vector<8x8x8xf32>
    %38 = arith.subf %34, %37 : vector<8x8x8xf32>
    %39 = math.exp %38 : vector<8x8x8xf32>
    %cst_6 = arith.constant dense<0.000000e+00> : vector<8x8xf32>
    %40 = vector.multi_reduction <add>, %39, %cst_6 [2] : vector<8x8x8xf32> to vector<8x8xf32>
    %41 = vector.shape_cast %40 : vector<8x8xf32> to vector<8x8x1xf32>
    %42 = vector.broadcast %41 : vector<8x8x1xf32> to vector<8x8x8xf32>
    %43 = arith.divf %39, %42 : vector<8x8x8xf32>
    "tpu.trace_start"() <{level = 10 : i32, message = "gqk,gke->gqe"}> : () -> ()
    %cst_7 = arith.constant dense<0.000000e+00> : vector<8x8x16xf32>
    %44 = tpu.matmul %43, %33, %cst_7 {dimension_numbers = #tpu.dot_dimension_numbers<[2], [1], [1], [2], [0, 0, 0, 1, 1, 2], [0], [0]>} : vector<8x8x8xf32>, vector<8x8x16xf32>, vector<8x8x16xf32> -> vector<8x8x16xf32>
    "tpu.trace_stop"() : () -> ()
    %45 = vector.extract_strided_slice %44 {offsets = [0, 0, 0], sizes = [2, 8, 16], strides = [1, 1, 1]} : vector<8x8x16xf32> to vector<2x8x16xf32>
    %46 = vector.shape_cast %45 : vector<2x8x16xf32> to vector<16x16xf32>
    %47 = vector.extract_strided_slice %44 {offsets = [2, 0, 0], sizes = [2, 8, 16], strides = [1, 1, 1]} : vector<8x8x16xf32> to vector<2x8x16xf32>
    %48 = vector.shape_cast %47 : vector<2x8x16xf32> to vector<16x16xf32>
    %49 = vector.extract_strided_slice %44 {offsets = [4, 0, 0], sizes = [2, 8, 16], strides = [1, 1, 1]} : vector<8x8x16xf32> to vector<2x8x16xf32>
    %50 = vector.shape_cast %49 : vector<2x8x16xf32> to vector<16x16xf32>
    %51 = vector.extract_strided_slice %44 {offsets = [6, 0, 0], sizes = [2, 8, 16], strides = [1, 1, 1]} : vector<8x8x16xf32> to vector<2x8x16xf32>
    %52 = vector.shape_cast %51 : vector<2x8x16xf32> to vector<16x16xf32>
    %53 = tpu.concatenate %46, %48, %50, %52 in 1 : vector<16x16xf32>, vector<16x16xf32>, vector<16x16xf32>, vector<16x16xf32> -> vector<16x64xf32>
    %c0_8 = arith.constant 0 : index
    %c0_9 = arith.constant 0 : index
    %54 = vector.load %arg2[%c0_8, %c0_9] : memref<65x32xf32, #tpu.memory_space<vmem>>, vector<64x32xf32>
    %c64 = arith.constant 64 : index
    %c0_10 = arith.constant 0 : index
    %55 = vector.load %arg2[%c64, %c0_10] : memref<65x32xf32, #tpu.memory_space<vmem>>, vector<1x32xf32>
    %cst_11 = arith.constant dense<0.000000e+00> : vector<16x32xf32>
    %56 = tpu.matmul %53, %54, %cst_11 {dimension_numbers = #tpu.dot_dimension_numbers<[1], [0], [0], [1], [0, 0, 1, 1], [], []>} : vector<16x64xf32>, vector<64x32xf32>, vector<16x32xf32> -> vector<16x32xf32>
    %57 = vector.broadcast %55 : vector<1x32xf32> to vector<16x32xf32>
    %58 = arith.addf %56, %57 : vector<16x32xf32>
    %59 = vector.shape_cast %58 : vector<16x32xf32> to vector<2x8x32xf32>
    %c0_12 = arith.constant 0 : index
    %c0_13 = arith.constant 0 : index
    %c0_14 = arith.constant 0 : index
    %60 = vector.load %arg3[%c0_12, %c0_13, %c0_14] : memref<2x8x32xf32, #tpu.memory_space<vmem>>, vector<2x8x32xf32>
    tpu.vector_store %arg3[%c0_12, %c0_13, %c0_14], %59 {strides = array<i32>} : memref<2x8x32xf32, #tpu.memory_space<vmem>>, vector<2x8x32xf32>,
    return
  }
}

</mosaic_0001>

<bundles_post_ra>
// kernel: tpu_custom_call.1
= control target key start
LH: loop header
LB: loop body
LE: loop exit
PB: predicated region body
PF: predicated region fallthrough
CT: control target
= control target key end

     0   :  { %v1831_v7 = vmov 0.0   ;;  %s2058_s0 = inlined_call_operand.vmem [shape: f32[2,8,32], index: 0, kind: input, shape index: {}]   ;;  %s2059_s1 = inlined_call_operand.vmem [shape: f32[32,192], index: 1, kind: input, shape index: {}]   ;;  %s2060_s2 = inlined_call_operand.vmem [shape: f32[65,32], index: 2, kind: input, shape index: {}]   ;;  %s2061_s3 = inlined_call_operand.hbm [shape: f32[2,8,32], index: 3, kind: output, shape index: {}]  }
   0x1   :  { %v18_v0 = vld [vmem:[%s2059_s1 + $0x8] sm:$0xff]  ;;  %v20_v1 = vld [vmem:[%s2059_s1 + $0x18] sm:$0xff]  ;;  %v17_v2 = vld [vmem:[%s2059_s1] sm:$0xff]  ;;  %96 = vmatprep.mubr.f32.mxu0 %v1831_v7  ;;  %1645 = vmatprep.subr.mxu1 %v1831_v7 }
   0x2   :  { %v1739_v3 = vpack.c.bf16 %v20_v1, %v18_v0  ;;  %v19_v4 = vld [vmem:[%s2059_s1 + $0x10] sm:$0xff]  ;;  %v22_v5 = vld [vmem:[%s2059_s1 + $0x28] sm:$0xff]  ;;  %v24_v6 = vld [vmem:[%s2059_s1 + $0x38] sm:$0xff] }
   0x3   :  { %v1741_v8 = vpack.c.bf16 %v19_v4, %v17_v2  ;;  %v1743_v9 = vpack.c.bf16 %v24_v6, %v22_v5  ;;  %v21_v10 = vld [vmem:[%s2059_s1 + $0x20] sm:$0xff]  ;;  %v23_v11 = vld [vmem:[%s2059_s1 + $0x30] sm:$0xff] }
   0x4   :  { %1740 = vmatprep.subr.bf16.mxu0 %v1739_v3 }
   0x5   :  { %8 = vsyncpa [#allocation3], 0  ;;  %1742 = vmatpush1.bf16.msra.mxu0 %v1741_v8  ;;  %v1745_v12 = vpack.c.bf16 %v23_v11, %v21_v10  ;;  %v15_v13 = vld [vmem:[%s2058_s0] sm:$0xff]  ;;  %vm25_vm0 = vcmask 261120   ;;  %v16_v14 = vld [vmem:[%s2058_s0 + $0x8] sm:$0xff]  ;;  %s1832_s1 = smov 96  }
   0x6   :  { %1744 = vmatprep.subr.bf16.mxu0 %v1743_v9  ;;  %s1833_s5 = smov 112   ;;  %vm1834_vm1 = vmmov 0   ;;  %s1835_s0 = smov 80   ;;  %vm145_vm2 = vcmask 130048   ;;  %vm752_vm3 = vcmask 64512   ;;  %vm1453_vm4 = vcmask 392192  }
   0x7   :  { %1647 = vmatprep.mubr.msk.f32.mxu1 %vm1834_vm1, %v1831_v7  ;;  %s1836_s6 = smov 64   ;;  %s1837_s23 = smov 16   ;;  %vm1469_vm5 = vcmask 523264  }
   0x8   :  { %s1838_s24 = smov 32   ;;  %s1839_s25 = smov 48  }
   0x9   :  { %1746 = vmatpush1.bf16.msra.mxu0 %v1745_v12  ;;  %s1840_s28 = smov [#allocation2]  }
   0xa   :  { %1640 = vmatprep.subr.mxu0 %v1831_v7  ;;  %s1558_s29 = sshll.u32 %s1840_s28, 4  ;;  %s1559_s29 = int_to_ptr.vmem [resolvable:$true] %s1558_s29 }
   0xb   :  { %s1807_s30 = scalar_lea.vmem %s1559_s29, 256  ;;  %p1812_p1 = scmp.lt.s32.totalorder %s1559_s29, %s1559_s29 }
   0xc   :  { %1569 = vmatmul.mubr.msk.f32.vlgmr.msra.gmra.mrb[0].mxu0 %vm25_vm0, %v15_v13  ;;  %p1808_p0 = scmp.ne.s32.totalorder %s1559_s29, %s1807_s30  ;;  %p1813_p2 = scmp.lt.s32.totalorder %s1807_s30, %s1807_s30 }
   0xd   :  { %102 = vmatprep.mubr.f32.mxu0 %v1831_v7 }
   0xe   :  { %p1814_p3 = por %p1813_p2, %p1812_p1 }
  0x10   :  { %1570 = vmatmul.mubr.msk.f32.gmra.mrb[2].mxu0 %vm25_vm0, %v16_v14  ;;  %p1815_p4 = pnand %p1814_p3, %p1808_p0 }
  0x11   :  { %1642 = vmatprep.mubr.msk.f32.mxu0 %vm1834_vm1, %v1831_v7 }
  0xdf   :  { %v98_v15 = vpop.f32.mrb[0].mxu0 }
  0xe0   :  { %115 = vrot.lane.b32.xlu1 %v98_v15, %s1832_s1  ;;  %111 = vrot.lane.b32.xlu0 %v98_v15, %s1833_s5  ;;  %v1901_v16 = vpop.f32.mrb[1].mxu0 }
  0xe3   :  { %v104_v17 = vpop.f32.mrb[2].mxu0 }
  0xe4   :  { %117 = vrot.lane.b32.xlu1 %v104_v17, %s1832_s1  ;;  %113 = vrot.lane.b32.xlu0 %v104_v17, %s1833_s5  ;;  %v1909_v18 = vpop.f32.mrb[3].mxu0 }
  0xe8   :  { %121 = vrot.lane.b32.xlu1 %v104_v17, %s1835_s0  ;;  %119 = vrot.lane.b32.xlu0 %v98_v15, %s1835_s0 }
  0xec   :  { %220 = vrot.lane.b32.xlu1 %v104_v17, %s1836_s6  ;;  %143 = vrot.lane.b32.xlu0 %v98_v15, %s1836_s6 }
 0x152   :  { %v116_v19 = vpop.permute.xlu1 %115  ;;  %v112_v20 = vpop.permute.xlu0 %111 }
 0x153   :  { %296 = vrot.lane.b32.xlu0 %v112_v20, %s1836_s6 }
 0x156   :  { %v118_v21 = vpop.permute.xlu1 %117  ;;  %v114_v22 = vpop.permute.xlu0 %113 }
 0x157   :  { %448 = vrot.lane.b32.xlu0 %v116_v19, %s1836_s6  ;;  %372 = vrot.lane.b32.xlu1 %v114_v22, %s1836_s6 }
 0x15a   :  { %v122_v23 = vpop.permute.xlu1 %121  ;;  %v120_v24 = vpop.permute.xlu0 %119 }
 0x15b   :  { %524 = vrot.lane.b32.xlu1 %v118_v21, %s1836_s6  ;;  %600 = vrot.lane.b32.xlu0 %v120_v24, %s1836_s6 }
 0x15e   :  { %v221_v25 = vpop.permute.xlu1 %220  ;;  %v144_v26 = vpop.permute.xlu0 %143 }
 0x15f   :  { %1646 = vmatpush3.xpose.msk.msra.mxu1 %vm145_vm2, %v221_v25  ;;  %676 = vrot.lane.b32.xlu1 %v122_v23, %s1836_s6 }
 0x160   :  { %1641 = vmatpush3.xpose.msk.msra.mxu0 %vm145_vm2, %v144_v26  ;;  %1650 = vmatprep.subr.mxu1 %v1831_v7 }
 0x161   :  { %1655 = vmatprep.subr.mxu0 %v1831_v7 }
 0x162   :  { %1648 = vmatmul.mubr.msk.f32.vlgmr.msra.gmra.mrb[0].mxu1 %vm145_vm2, %v104_v17 }
 0x163   :  { %1643 = vmatmul.mubr.msk.f32.vlgmr.msra.gmra.mrb[4].mxu0 %vm145_vm2, %v98_v15  ;;  %1652 = vmatprep.mubr.msk.f32.mxu1 %vm1834_vm1, %v1831_v7 }
 0x164   :  { %1657 = vmatprep.mubr.msk.f32.mxu0 %vm1834_vm1, %v1831_v7 }
 0x1c5   :  { %v297_v27 = vpop.permute.xlu0 %296 }
 0x1c6   :  { %1651 = vmatpush3.xpose.msk.msra.mxu1 %vm145_vm2, %v297_v27 }
 0x1c7   :  { %1660 = vmatprep.subr.mxu1 %v1831_v7 }
 0x1c9   :  { %v373_v28 = vpop.permute.xlu1 %372  ;;  %1653 = vmatmul.mubr.msk.f32.vlgmr.msra.gmra.mrb[2].mxu1 %vm145_vm2, %v112_v20  ;;  %v449_v29 = vpop.permute.xlu0 %448 }
 0x1ca   :  { %1656 = vmatpush3.xpose.msk.msra.mxu0 %vm145_vm2, %v373_v28  ;;  %1661 = vmatpush3.xpose.msk.msra.mxu1 %vm145_vm2, %v449_v29 }
 0x1cb   :  { %1662 = vmatprep.mubr.msk.f32.mxu1 %vm1834_vm1, %v1831_v7  ;;  %1665 = vmatprep.subr.mxu0 %v1831_v7 }
 0x1cc   :  { %1670 = vmatprep.subr.mxu1 %v1831_v7 }
 0x1cd   :  { %v525_v30 = vpop.permute.xlu1 %524  ;;  %1658 = vmatmul.mubr.msk.f32.vlgmr.msra.gmra.mrb[6].mxu0 %vm145_vm2, %v114_v22  ;;  %1663 = vmatmul.mubr.msk.f32.vlgmr.msra.gmra.mrb[4].mxu1 %vm145_vm2, %v116_v19  ;;  %v601_v31 = vpop.permute.xlu0 %600 }
 0x1ce   :  { %1666 = vmatpush3.xpose.msk.msra.mxu0 %vm145_vm2, %v525_v30  ;;  %1671 = vmatpush3.xpose.msk.msra.mxu1 %vm145_vm2, %v601_v31 }
 0x1cf   :  { %1667 = vmatprep.mubr.msk.f32.mxu0 %vm1834_vm1, %v1831_v7  ;;  %1672 = vmatprep.mubr.msk.f32.mxu1 %vm1834_vm1, %v1831_v7 }
 0x1d0   :  { %1675 = vmatprep.subr.mxu0 %v1831_v7  ;;  %1680 = vmatprep.subr.mxu1 %v1831_v7 }
 0x1d1   :  { %v677_v32 = vpop.permute.xlu1 %676  ;;  %1668 = vmatmul.mubr.msk.f32.vlgmr.msra.gmra.mrb[8].mxu0 %vm145_vm2, %v118_v21  ;;  %1673 = vmatmul.mubr.msk.f32.vlgmr.msra.gmra.mrb[6].mxu1 %vm145_vm2, %v120_v24 }
 0x1d2   :  { %1676 = vmatpush3.xpose.msk.msra.mxu0 %vm145_vm2, %v677_v32  ;;  %1681 = vmatpush3.msra.mxu1 %v1901_v16 }
 0x1d3   :  { %1677 = vmatprep.mubr.msk.f32.mxu0 %vm1834_vm1, %v1831_v7  ;;  %1685 = vmatprep.subr.mxu0 %v1831_v7 }
 0x1d4   :  { %1682 = vmatprep.mubr.msk.f32.mxu1 %vm1834_vm1, %v1831_v7  ;;  %1690 = vmatprep.subr.mxu1 %v1831_v7 }
 0x1d5   :  { %1678 = vmatmul.mubr.msk.f32.vlgmr.msra.gmra.mrb[10].mxu0 %vm145_vm2, %v122_v23 }
 0x1d6   :  { %1686 = vmatpush3.msra.mxu0 %v1909_v18  ;;  %1687 = vmatprep.mubr.msk.f32.mxu0 %vm1834_vm1, %v1831_v7 }
 0x1d7   :  { %1695 = vmatprep.subr.mxu0 %v1831_v7 }
 0x235   :  { %v292_v33 = vpop.f32.mrb[0].mxu1 }
 0x236   :  { %v216_v34 = vpop.f32.mrb[4].mxu0  ;;  %v1649_v35 = vpop.f32.mrb[1].mxu1  ;;  %v756_v36 = vsel %vm752_vm3, %v292_v33, -inf }
 0x237   :  { %v1644_v37 = vpop.f32.mrb[5].mxu0  ;;  %757 = vmax.xlane.f32.xlu1 %v756_v36  ;;  %v753_v38 = vsel %vm752_vm3, %v216_v34, -inf }
 0x238   :  { %754 = vmax.xlane.f32.xlu0 %v753_v38 }
 0x29c   :  { %v368_v39 = vpop.f32.mrb[2].mxu1 }
 0x29d   :  { %v1654_v40 = vpop.f32.mrb[3].mxu1  ;;  %v759_v41 = vsel %vm752_vm3, %v368_v39, -inf }
 0x29e   :  { %760 = vmax.xlane.f32.xlu0 %v759_v41 }
 0x2a0   :  { %v444_v42 = vpop.f32.mrb[6].mxu0  ;;  %v520_v43 = vpop.f32.mrb[4].mxu1 }
 0x2a1   :  { %v1659_v44 = vpop.f32.mrb[7].mxu0  ;;  %v1664_v45 = vpop.f32.mrb[5].mxu1  ;;  %v765_v46 = vsel %vm752_vm3, %v520_v43, -inf  ;;  %v762_v47 = vsel %vm752_vm3, %v444_v42, -inf }
 0x2a2   :  { %766 = vmax.xlane.f32.xlu1 %v765_v46  ;;  %763 = vmax.xlane.f32.xlu0 %v762_v47 }
 0x2a4   :  { %v596_v48 = vpop.f32.mrb[8].mxu0  ;;  %v672_v49 = vpop.f32.mrb[6].mxu1 }
 0x2a5   :  { %v1669_v50 = vpop.f32.mrb[9].mxu0  ;;  %v1674_v51 = vpop.f32.mrb[7].mxu1  ;;  %v771_v52 = vsel %vm752_vm3, %v672_v49, -inf  ;;  %v768_v53 = vsel %vm752_vm3, %v596_v48, -inf }
 0x2a6   :  { %772 = vmax.xlane.f32.xlu1 %v771_v52  ;;  %769 = vmax.xlane.f32.xlu0 %v768_v53 }
 0x2a8   :  { %v748_v54 = vpop.f32.mrb[10].mxu0 }
 0x2a9   :  { %v1679_v55 = vpop.f32.mrb[11].mxu0  ;;  %v774_v56 = vsel %vm752_vm3, %v748_v54, -inf }
 0x2aa   :  { %775 = vmax.xlane.f32.xlu0 %v774_v56 }
 0x2b7   :  { %125 = vrot.lane.b32.xlu1 %v1901_v16, %s1833_s5 }
 0x2bb   :  { %131 = vrot.lane.b32.xlu1 %v1901_v16, %s1832_s1 }
 0x2bf   :  { %133 = vrot.lane.b32.xlu1 %v1909_v18, %s1832_s1 }
 0x2c0   :  { %127 = vrot.lane.b32.xlu0 %v1909_v18, %s1833_s5 }
 0x2c4   :  { %v758_v57 = vpop.xlane.xlu1 %757 }
 0x2c5   :  { %v778_v58 = vsub.f32 %v292_v33, %v758_v57  ;;  %v755_v59 = vpop.xlane.xlu0 %754 }
 0x2c6   :  { %v777_v61 = vsub.f32 %v216_v34, %v755_v59 }
 0x2c7   :  { %v787_v60 = vmul.f32 1.442695, %v778_v58 }
 0x2c8   :  { %v785_v62 = vmul.f32 1.442695, %v777_v61 }
 0x2c9   :  { %1775 = vpow2.f32 %v787_v60 }
 0x2ca   :  { %1777 = vpow2.f32 %v785_v62 }
 0x2d3   :  { %v1776_v63 = vpop.eup %1775 }
 0x2d4   :  { %v804_v0 = vsel %vm752_vm3, %v1776_v63, 0.0  ;;  %v1778_v1 = vpop.eup %1777 }
 0x2d5   :  { %v801_v2 = vsel %vm752_vm3, %v1778_v1, 0.0 }
 0x2df   :  { %805 = vadd.xlane.f32.xlu0 %v804_v0  ;;  %v1456_v0 = vld [vmem:[%s2060_s2] sm:$0xff] }
 0x2e3   :  { %802 = vadd.xlane.f32.xlu1 %v801_v2 }
 0x32b   :  { %v761_v3 = vpop.xlane.xlu0 %760 }
 0x32c   :  { %v779_v4 = vsub.f32 %v368_v39, %v761_v3 }
 0x32e   :  { %v789_v5 = vmul.f32 1.442695, %v779_v4 }
 0x32f   :  { %v767_v6 = vpop.xlane.xlu1 %766  ;;  %v764_v8 = vpop.xlane.xlu0 %763 }
 0x330   :  { %1779 = vpow2.f32 %v789_v5  ;;  %v781_v9 = vsub.f32 %v520_v43, %v767_v6  ;;  %v780_v10 = vsub.f32 %v444_v42, %v764_v8  ;;  %v1459_v8 = vld [vmem:[%s2060_s2 + $0x18] sm:$0xff] }
 0x332   :  { %v793_v11 = vmul.f32 1.442695, %v781_v9  ;;  %v791_v12 = vmul.f32 1.442695, %v780_v10  ;;  %v1460_v10 = vld [vmem:[%s2060_s2 + $0x20] sm:$0xff] }
 0x333   :  { %v773_v13 = vpop.xlane.xlu1 %772  ;;  %v770_v14 = vpop.xlane.xlu0 %769 }
 0x334   :  { %1781 = vpow2.f32 %v793_v11  ;;  %v783_v15 = vsub.f32 %v672_v49, %v773_v13  ;;  %v782_v17 = vsub.f32 %v596_v48, %v770_v14  ;;  %v1461_v11 = vld [vmem:[%s2060_s2 + $0x28] sm:$0xff]  ;;  %v1462_v13 = vld [vmem:[%s2060_s2 + $0x30] sm:$0xff]  ;;  %v1463_v14 = vld [vmem:[%s2060_s2 + $0x38] sm:$0xff] }
 0x335   :  { %1783 = vpow2.f32 %v791_v12  ;;  %v1755_v12 = vpack.c.bf16 %v1461_v11, %v1460_v10 }
 0x336   :  { %v797_v19 = vmul.f32 1.442695, %v783_v15  ;;  %v795_v20 = vmul.f32 1.442695, %v782_v17  ;;  %v1759_v15 = vpack.c.bf16 %v1463_v14, %v1462_v13 }
 0x337   :  { %v776_v21 = vpop.xlane.xlu0 %775  ;;  %v126_v36 = vpop.permute.xlu1 %125 }
 0x338   :  { %1785 = vpow2.f32 %v797_v19  ;;  %v784_v22 = vsub.f32 %v748_v54, %v776_v21 }
 0x339   :  { %1787 = vpow2.f32 %v795_v20 }
 0x33a   :  { %v1780_v23 = vpop.eup %1779  ;;  %v799_v24 = vmul.f32 1.442695, %v784_v22 }
 0x33b   :  { %v807_v25 = vsel %vm752_vm3, %v1780_v23, 0.0  ;;  %v132_v37 = vpop.permute.xlu1 %131  ;;  %v128_v38 = vpop.permute.xlu0 %127 }
 0x33c   :  { %1789 = vpow2.f32 %v799_v24  ;;  %808 = vadd.xlane.f32.xlu1 %v807_v25 }
 0x33e   :  { %v1782_v26 = vpop.eup %1781 }
 0x33f   :  { %v1784_v27 = vpop.eup %1783  ;;  %v813_v28 = vsel %vm752_vm3, %v1782_v26, 0.0  ;;  %v134_v39 = vpop.permute.xlu1 %133 }
 0x340   :  { %814 = vadd.xlane.f32.xlu1 %v813_v28  ;;  %v810_v29 = vsel %vm752_vm3, %v1784_v27, 0.0 }
 0x341   :  { %811 = vadd.xlane.f32.xlu0 %v810_v29 }
 0x342   :  { %v1786_v30 = vpop.eup %1785 }
 0x343   :  { %v1788_v31 = vpop.eup %1787  ;;  %v819_v32 = vsel %vm752_vm3, %v1786_v30, 0.0 }
 0x344   :  { %820 = vadd.xlane.f32.xlu1 %v819_v32  ;;  %v816_v33 = vsel %vm752_vm3, %v1788_v31, 0.0 }
 0x345   :  { %817 = vadd.xlane.f32.xlu0 %v816_v33 }
 0x346   :  { %v1980_v34 = vpop.eup %1789 }
 0x347   :  { %v822_v35 = vsel %vm752_vm3, %v1980_v34, 0.0 }
 0x349   :  { %823 = vadd.xlane.f32.xlu0 %v822_v35 }
 0x355   :  { %139 = vrot.lane.b32.xlu1 %v1909_v18, %s1835_s0 }
 0x35f   :  { %137 = vrot.lane.b32.xlu0 %v1901_v16, %s1835_s0 }
 0x36c   :  { %v806_v40 = vpop.xlane.xlu0 %805 }
 0x36d   :  { %1791 = vrcp.f32 %v806_v40 }
 0x370   :  { %v803_v41 = vpop.xlane.xlu1 %802 }
 0x371   :  { %1793 = vrcp.f32 %v803_v41 }
 0x377   :  { %v1792_v42 = vpop.eup %1791 }
 0x378   :  { %v828_v43 = vmul.f32 %v1792_v42, %v1776_v63  ;;  %v1595_v42 = vld [vmem:[%s2060_s2 + $0x40] ss:$0 sm:$0xff] }
 0x37a   :  { %1688 = vmatmul.mubr.msk.f32.vlgmr.msra.gmra.mrb[12].mxu0 %vm752_vm3, %v828_v43 }
 0x37b   :  { %v1794_v44 = vpop.eup %1793  ;;  %1696 = vmatpush3.msra.mxu0 %v128_v38  ;;  %1697 = vmatprep.mubr.msk.f32.mxu0 %vm1834_vm1, %v1831_v7 }
 0x37c   :  { %v826_v18 = vmul.f32 %v1794_v44, %v1778_v1  ;;  %1705 = vmatprep.subr.mxu0 %v1831_v7  ;;  %v1457_v1 = vld [vmem:[%s2060_s2 + $0x8] sm:$0xff] }
 0x37d   :  { %v1747_v2 = vpack.c.bf16 %v1457_v1, %v1456_v0 }
 0x37e   :  { %1683 = vmatmul.mubr.msk.f32.vlgmr.msra.gmra.mrb[8].mxu1 %vm752_vm3, %v826_v18 }
 0x37f   :  { %1691 = vmatpush3.msra.mxu1 %v126_v36  ;;  %1692 = vmatprep.mubr.msk.f32.mxu1 %vm1834_vm1, %v1831_v7 }
 0x380   :  { %1700 = vmatprep.subr.mxu1 %v1831_v7 }
 0x3c9   :  { %v809_v16 = vpop.xlane.xlu1 %808 }
 0x3ca   :  { %1795 = vrcp.f32 %v809_v16 }
 0x3cd   :  { %v815_v45 = vpop.xlane.xlu1 %814 }
 0x3ce   :  { %1797 = vrcp.f32 %v815_v45  ;;  %v812_v46 = vpop.xlane.xlu0 %811 }
 0x3cf   :  { %1799 = vrcp.f32 %v812_v46 }
 0x3d1   :  { %v821_v47 = vpop.xlane.xlu1 %820 }
 0x3d2   :  { %1801 = vrcp.f32 %v821_v47  ;;  %v818_v48 = vpop.xlane.xlu0 %817 }
 0x3d3   :  { %1803 = vrcp.f32 %v818_v48 }
 0x3d4   :  { %v1796_v49 = vpop.eup %1795 }
 0x3d5   :  { %v830_v50 = vmul.f32 %v1796_v49, %v1780_v23  ;;  %v140_v61 = vpop.permute.xlu1 %139 }
 0x3d6   :  { %v824_v51 = vpop.xlane.xlu0 %823 }
 0x3d7   :  { %1805 = vrcp.f32 %v824_v51  ;;  %1693 = vmatmul.mubr.msk.f32.vlgmr.msra.gmra.mrb[10].mxu1 %vm752_vm3, %v830_v50 }
 0x3d8   :  { %v1798_v52 = vpop.eup %1797  ;;  %1701 = vmatpush3.msra.mxu1 %v132_v37  ;;  %1702 = vmatprep.mubr.msk.f32.mxu1 %vm1834_vm1, %v1831_v7 }
 0x3d9   :  { %v1800_v53 = vpop.eup %1799  ;;  %v834_v54 = vmul.f32 %v1798_v52, %v1782_v26  ;;  %1710 = vmatprep.subr.mxu1 %v1831_v7 }
 0x3da   :  { %v832_v55 = vmul.f32 %v1800_v53, %v1784_v27  ;;  %v138_v56 = vpop.permute.xlu0 %137 }
 0x3db   :  { %1703 = vmatmul.mubr.msk.f32.vlgmr.msra.gmra.mrb[12].mxu1 %vm752_vm3, %v834_v54 }
 0x3dc   :  { %v1802_v57 = vpop.eup %1801  ;;  %1698 = vmatmul.mubr.msk.f32.vlgmr.msra.gmra.mrb[14].mxu0 %vm752_vm3, %v832_v55  ;;  %1711 = vmatpush3.msra.mxu1 %v138_v56 }
 0x3dd   :  { %v1804_v58 = vpop.eup %1803  ;;  %v838_v59 = vmul.f32 %v1802_v57, %v1786_v30  ;;  %1706 = vmatpush3.msra.mxu0 %v134_v39  ;;  %1707 = vmatprep.mubr.msk.f32.mxu0 %vm1834_vm1, %v1831_v7 }
 0x3de   :  { %v836_v60 = vmul.f32 %v1804_v58, %v1788_v31  ;;  %1712 = vmatprep.mubr.msk.f32.mxu1 %vm1834_vm1, %v1831_v7  ;;  %1715 = vmatprep.subr.mxu0 %v1831_v7 }
 0x3df   :  { %1713 = vmatmul.mubr.msk.f32.vlgmr.msra.gmra.mrb[14].mxu1 %vm752_vm3, %v838_v59  ;;  %1748 = vmatprep.subr.bf16.mxu1 %v1747_v2 }
 0x3e0   :  { %1708 = vmatmul.mubr.msk.f32.vlgmr.msra.gmra.mrb[16].mxu0 %vm752_vm3, %v836_v60  ;;  %1750 = vmatpush3.bf16.msra.mxu1 %v1747_v2 }
 0x3e1   :  { %v1806_v62 = vpop.eup %1805  ;;  %1716 = vmatpush3.msra.mxu0 %v140_v61  ;;  %1717 = vmatprep.mubr.msk.f32.mxu0 %vm1834_vm1, %v1831_v7  ;;  %v1458_v7 = vld [vmem:[%s2060_s2 + $0x10] sm:$0xff] }
 0x3e2   :  { %v840_v63 = vmul.f32 %v1806_v62, %v1980_v34  ;;  %v1751_v9 = vpack.c.bf16 %v1459_v8, %v1458_v7 }
 0x3e4   :  { %1718 = vmatmul.mubr.msk.f32.vlgmr.msra.gmra.mrb[18].mxu0 %vm752_vm3, %v840_v63  ;;  %1752 = vmatprep.subr.bf16.mxu1 %v1751_v9 }
 0x3e5   :  { %1754 = vmatpush3.bf16.msra.mxu1 %v1751_v9 }
 0x3e6   :  { %1756 = vmatprep.subr.bf16.mxu1 %v1755_v12 }
 0x3e9   :  { %1758 = vmatpush3.bf16.msra.mxu1 %v1755_v12 }
 0x3ea   :  { %1760 = vmatprep.subr.bf16.mxu1 %v1759_v15 }
 0x3ed   :  { %1762 = vmatpush3.bf16.msra.mxu1 %v1759_v15 }
 0x44d   :  { %v983_v3 = vpop.f32.mrb[12].mxu0 }
 0x44e   :  { %v1689_v4 = vpop.f32.mrb[13].mxu0 }
 0x451   :  { %v910_v5 = vpop.f32.mrb[8].mxu1 }
 0x452   :  { %v1684_v6 = vpop.f32.mrb[9].mxu1 }
 0x4aa   :  { %v1056_v17 = vpop.f32.mrb[10].mxu1 }
 0x4ab   :  { %v1694_v19 = vpop.f32.mrb[11].mxu1  ;;  %1427 = vrot.lane.b32.xlu0 %v1056_v17, %s1837_s23 }
 0x4ae   :  { %v1202_v20 = vpop.f32.mrb[12].mxu1 }
 0x4af   :  { %v1129_v21 = vpop.f32.mrb[14].mxu0  ;;  %v1704_v22 = vpop.f32.mrb[13].mxu1  ;;  %1435 = vrot.lane.b32.xlu0 %v1202_v20, %s1838_s24 }
 0x4b0   :  { %1429 = vrot.lane.b32.xlu1 %v1129_v21, %s1837_s23  ;;  %v1699_v23 = vpop.f32.mrb[15].mxu0 }
 0x4b2   :  { %v1348_v24 = vpop.f32.mrb[14].mxu1 }
 0x4b3   :  { %v1275_v25 = vpop.f32.mrb[16].mxu0  ;;  %1443 = vrot.lane.b32.xlu0 %v1348_v24, %s1839_s25  ;;  %v1714_v26 = vpop.f32.mrb[15].mxu1 }
 0x4b4   :  { %1437 = vrot.lane.b32.xlu1 %v1275_v25, %s1838_s24  ;;  %v1709_v27 = vpop.f32.mrb[17].mxu0 }
 0x4b7   :  { %v1421_v28 = vpop.f32.mrb[18].mxu0 }
 0x4b8   :  { %1445 = vrot.lane.b32.xlu1 %v1421_v28, %s1839_s25  ;;  %v1719_v29 = vpop.f32.mrb[19].mxu0 }
 0x51d   :  { %v1428_v30 = vpop.permute.xlu0 %1427 }
 0x51e   :  { %v1449_v33 = vsel %vm145_vm2, %v910_v5, %v1428_v30 }
 0x521   :  { %v1436_v31 = vpop.permute.xlu0 %1435 }
 0x522   :  { %v1430_v32 = vpop.permute.xlu1 %1429  ;;  %v1451_v34 = vsel %vm25_vm0, %v1449_v33, %v1436_v31 }
 0x523   :  { %v1450_v38 = vsel %vm145_vm2, %v983_v3, %v1430_v32 }
 0x525   :  { %v1444_v35 = vpop.permute.xlu0 %1443 }
 0x526   :  { %v1454_v36 = vsel %vm1453_vm4, %v1451_v34, %v1444_v35  ;;  %v1438_v37 = vpop.permute.xlu1 %1437 }
 0x527   :  { %1736 = vmatprep.mubr.msk.f32.mxu1 %vm1469_vm5, %v1454_v36  ;;  %v1452_v39 = vsel %vm25_vm0, %v1450_v38, %v1438_v37 }
 0x52a   :  { %v1446_v40 = vpop.permute.xlu1 %1445 }
 0x52b   :  { %v1455_v41 = vsel %vm1453_vm4, %v1452_v39, %v1446_v40 }
 0x52c   :  { %1737 = vmatmul.mubr.msk.f32.vlgmr.msra.gmra.mrb[16].mxu1 %vm1469_vm5, %v1455_v41 }
 0x5ff   :  { %v1738_v43 = vpop.f32.mrb[16].mxu1 }
 0x600   :  { %v1548_v44 = vadd.f32 %v1738_v43, %v1595_v42  ;;  %v1542_v18 = vpop.f32.mrb[17].mxu1 }
 0x601   :  { %v1543_v16 = vadd.f32 %v1595_v42, %v1542_v18 }
 0x602   :  { %1552 = vst.msk [vmem:[#allocation2 + $0x8] sm:$0xff] %vm25_vm0, %v1548_v44 }
 0x603   :  { %1551 = vst.msk [vmem:[#allocation2] sm:$0xff] %vm25_vm0, %v1543_v16 }
 0x604   :  { %1818 = shalt.err (!%p1815_p4)
}
 0x605   :  { %s1819_s1 = scalar_lea.hbm %s2061_s3, 256 }
 0x606   :  { %p1820_p5 = scmp.ne.s32.totalorder %s2061_s3, %s1819_s1  ;;  %p1823_p6 = scmp.lt.u32.totalorder %s1819_s1, %s2061_s3 }
 0x608   :  { %p1825_p7 = pnand %p1823_p6, %p1820_p5 }
 0x60a   :  { %1828 = shalt.err (!%p1825_p7)
}
 0x60b   :  { %s1841_s8 = smov 128   ;;  %s1842_s9 = smov 8  }
 0x60c   :  { %1564 = dma.vmem_to_hbm [thread:$0]  %s1559_s29, 256, %s2061_s3, [#allocation3], %s1841_s8, %s1841_s8, %s1842_s9  }
 0x60d   :  { %1829 = dma.done.wait [#allocation3], 256  }
 0x60e   :  { %1830 = vsyncadd [#allocation3], 4294967040 }
 0x60f   :  { %1568 = vsyncpa [#allocation3], 1 }

</bundles_post_ra>
